<compile_context>
chip_gen: v7x
topology: tpu7x:2x2x1
jax: 0.10.0
libtpu: 0.0.40
codegen_flags: <defaults>
</compile_context>

<pallas_src>
import functools

import jax
import jax.numpy as jnp
import numpy as np
from jax.experimental import pallas as pl
from jax.experimental.pallas import tpu as pltpu


def _rmsd_count_kernel(diff_ref, out_ref, *, thresh_sq):
    # diff_ref: (B_TILE, M) f32, lane-dense, pre-scaled by 1/sqrt(n_atoms).
    d = diff_ref[...]
    per_row = jnp.sum(d * d, axis=1, keepdims=True)                # (B_TILE, 1)
    count = jnp.sum((per_row < thresh_sq).astype(jnp.float32))     # partial count
    # Lane-dense, unmasked store of this block's partial count (no RMW accumulator).
    out_ref[...] = jnp.broadcast_to(count, out_ref.shape)


def rmsd_fraction(coords_pred_list, coords_list, distance):
    """Pallas equivalent of RMSDfraction(distance)(coords_pred_list, coords_list)."""
    assert len(coords_pred_list) == len(coords_list) and len(coords_list) > 0
    B = len(coords_list)
    n_max = max(int(np.asarray(c).shape[0]) for c in coords_list)

    # Lane-dense row length: multiple of 128.
    M = max(128, ((3 * n_max + 127) // 128) * 128)

    # Rows per grid step: multiple of 8, <= ~12 MiB per pipeline buffer
    # (single input x 2 buffers ~ 24 MiB, inside the 48 MiB VMEM limit below).
    target_elems = (12 * 1024 * 1024) // 4                          # f32 elems / buffer
    bt_budget = max(8, ((target_elems // M) // 8) * 8)

    B_pad8 = ((B + 7) // 8) * 8
    if B_pad8 >= 16:
        # Ensure at least 2 grid blocks so both v7x TensorCores get work.
        bt_cap = max(8, ((B_pad8 // 2) // 8) * 8)
    else:
        bt_cap = 8
    B_TILE = int(min(bt_budget, bt_cap))
    B_pad = ((B + B_TILE - 1) // B_TILE) * B_TILE
    num_blocks = B_pad // B_TILE

    dist = float(distance)
    # rmsd < distance is impossible for distance <= 0 (rmsd >= 0, NaN compares False),
    # so use a negative threshold that no non-negative sum can beat.
    thresh_sq = dist * dist if dist > 0.0 else -1.0
    # Poison value for padded / 0-atom rows: its square alone exceeds thresh_sq.
    poison = np.float32(2.0 * max(abs(dist), 1.0))

    # Host-side (NumPy) diff construction: one device transfer, no per-molecule jnp ops.
    diff_np = np.zeros((B_pad, M), np.float32)
    diff_np[:, 0] = poison          # default: padded rows / empty molecules never count
    for i, (p, c) in enumerate(zip(coords_pred_list, coords_list)):
        p = np.asarray(p, np.float32).reshape(-1)
        c = np.asarray(c, np.float32).reshape(-1)
        n_atoms = c.shape[0] // 3
        if n_atoms > 0:
            row = (p - c) / np.float32(np.sqrt(n_atoms))
            diff_np[i, : row.shape[0]] = row   # overwrites the poison at column 0

    diff = jnp.asarray(diff_np)

    out = pl.pallas_call(
        functools.partial(_rmsd_count_kernel, thresh_sq=thresh_sq),
        out_shape=jax.ShapeDtypeStruct((num_blocks, 8, 128), jnp.float32),
        grid_spec=pltpu.PrefetchScalarGridSpec(
            num_scalar_prefetch=0,
            grid=(num_blocks,),
            in_specs=[
                pl.BlockSpec((B_TILE, M), lambda i: (i, 0)),        # diff rows (lane-dense)
            ],
            out_specs=pl.BlockSpec((1, 8, 128), lambda i: (i, 0, 0)),  # per-block partial count
        ),
        compiler_params=pltpu.CompilerParams(
            dimension_semantics=("parallel",),   # each block writes its own output tile
            vmem_limit_bytes=48 << 20,           # safe on v5e/v6e (128 MiB) and v7x (64 MiB)
        ),
    )(diff)

    count = jnp.sum(out[:, 0, 0])
    return 100.0 * count / B


def _reference(coords_pred_list, coords_list, distance):
    rmsds = []
    for p, c in zip(coords_pred_list, coords_list):
        d = jnp.asarray(p, jnp.float32) - jnp.asarray(c, jnp.float32)
        rmsds.append(jnp.sqrt(jnp.mean(jnp.sum(d * d, axis=1))))
    rmsds = jnp.stack(rmsds)
    count = rmsds < distance
    return 100.0 * count.sum() / count.shape[0]


if __name__ == "__main__":
    key = jax.random.PRNGKey(0)
    distance = 2.0

    # Test 1: 4 ragged molecules with a mix of below/above-threshold noise.
    atom_counts = [8, 10, 12, 16]
    noise_scales = [0.1, 0.5, 1.5, 3.0]
    coords_pred_list, coords_list = [], []
    for n, s in zip(atom_counts, noise_scales):
        key, k1, k2 = jax.random.split(key, 3)
        base = jax.random.normal(k1, (n, 3), dtype=jnp.float32) * 3.0
        noise = jax.random.normal(k2, (n, 3), dtype=jnp.float32) * s
        coords_list.append(base)
        coords_pred_list.append(base + noise)

    result = jax.block_until_ready(rmsd_fraction(coords_pred_list, coords_list, distance))
    ref = _reference(coords_pred_list, coords_list, distance)
    np.testing.assert_allclose(np.asarray(result), np.asarray(ref), rtol=1e-5, atol=1e-5)

    # Test 2: more molecules (exercises the multi-block grid / parallel path).
    coords_pred_list2, coords_list2 = [], []
    for j in range(20):
        n = 5 + (j % 7)
        key, k1, k2 = jax.random.split(key, 3)
        base = jax.random.normal(k1, (n, 3), dtype=jnp.float32) * 2.0
        noise = jax.random.normal(k2, (n, 3), dtype=jnp.float32) * (0.2 + 0.25 * (j % 5))
        coords_list2.append(base)
        coords_pred_list2.append(base + noise)

    result2 = jax.block_until_ready(rmsd_fraction(coords_pred_list2, coords_list2, distance))
    ref2 = _reference(coords_pred_list2, coords_list2, distance)
    np.testing.assert_allclose(np.asarray(result2), np.asarray(ref2), rtol=1e-5, atol=1e-5)

    print("KERNEL_OK")
</pallas_src>

<mosaic_0001>
module attributes {stable_mosaic.version = 11 : i64} {
  func.func @_rmsd_count_kernel(%arg0: i32, %arg1: memref<8x128xf32, #tpu.memory_space<vmem>>, %arg2: memref<1x8x128xf32, #tpu.memory_space<vmem>>) attributes {dimension_semantics = [#tpu.dimension_semantics<parallel>], iteration_bounds = array<i64: 1>, scalar_prefetch = 0 : i64, scratch_operands = 0 : i64, tpu.core_type = #tpu.core_type<tc>, window_params = [{transform_indices = @transform_0, window_bounds = array<i64: 8, 128>}, {transform_indices = @transform_1, window_bounds = array<i64: 1, 8, 128>}]} {
    %c0 = arith.constant 0 : index
    %c0_0 = arith.constant 0 : index
    %0 = vector.load %arg1[%c0, %c0_0] : memref<8x128xf32, #tpu.memory_space<vmem>>, vector<8x128xf32>
    %1 = arith.mulf %0, %0 : vector<8x128xf32>
    %cst = arith.constant dense<0.000000e+00> : vector<8xf32>
    %2 = vector.multi_reduction <add>, %1, %cst [1] : vector<8x128xf32> to vector<8xf32>
    %3 = vector.shape_cast %2 : vector<8xf32> to vector<8x1xf32>
    %cst_1 = arith.constant 4.000000e+00 : f32
    %4 = vector.broadcast %cst_1 : f32 to vector<8x1xf32>
    %5 = arith.cmpf olt, %3, %4 : vector<8x1xf32>
    %6 = arith.extui %5 : vector<8x1xi1> to vector<8x1xi32>
    %7 = arith.sitofp %6 : vector<8x1xi32> to vector<8x1xf32>
    %8 = vector.shape_cast %7 : vector<8x1xf32> to vector<1x8x1xf32>
    %cst_2 = arith.constant dense<0.000000e+00> : vector<1xf32>
    %9 = vector.multi_reduction <add>, %8, %cst_2 [1, 2] : vector<1x8x1xf32> to vector<1xf32>
    %10 = vector.shape_cast %9 : vector<1xf32> to vector<1x1x1xf32>
    %11 = vector.extract %10[0, 0, 0] : f32 from vector<1x1x1xf32>
    %12 = vector.broadcast %11 : f32 to vector<1x8x128xf32>
    %c0_3 = arith.constant 0 : index
    %c0_4 = arith.constant 0 : index
    %c0_5 = arith.constant 0 : index
    %13 = vector.load %arg2[%c0_3, %c0_4, %c0_5] : memref<1x8x128xf32, #tpu.memory_space<vmem>>, vector<1x8x128xf32>
    tpu.vector_store %arg2[%c0_3, %c0_4, %c0_5], %12 {strides = array<i32>} : memref<1x8x128xf32, #tpu.memory_space<vmem>>, vector<1x8x128xf32>,
    return
  }
  func.func @transform_0(%arg0: i32) -> (i32, i32) {
    %c0_i32 = arith.constant 0 : i32
    %c0_i32_0 = arith.constant 0 : i32
    return %arg0, %c0_i32 : i32, i32
  }
  func.func @transform_1(%arg0: i32) -> (i32, i32, i32) {
    %c0_i32 = arith.constant 0 : i32
    %c0_i32_0 = arith.constant 0 : i32
    %c0_i32_1 = arith.constant 0 : i32
    return %arg0, %c0_i32, %c0_i32_0 : i32, i32, i32
  }
}

</mosaic_0001>

<bundles_post_ra>
// kernel: tpu_custom_call.1
= control target key start
LH: loop header
LB: loop body
LE: loop exit
PB: predicated region body
PF: predicated region fallthrough
CT: control target
= control target key end

     0   :  { %6 = vsyncpa [#allocation3], 0  ;;  %s147_s0 = inlined_call_operand.hbm [shape: f32[8,128], index: 0, kind: input, shape index: {}]   ;;  %s148_s1 = inlined_call_operand.hbm [shape: f32[1,8,128], index: 1, kind: output, shape index: {}]  }
   0x1   :  { %7 = vsyncpa [#allocation4], 0  ;;  %s110_s6 = smov [#allocation2]   ;;  %s62_s10 = scalar_lea.hbm %s147_s0, 128 }
   0x2   :  { %s14_s7 = sshll.u32 %s110_s6, 4  ;;  %p63_p0 = scmp.ne.s32.totalorder %s147_s0, %s62_s10  ;;  %s15_s7 = int_to_ptr.vmem [resolvable:$true] %s14_s7 }
   0x3   :  { %p66_p1 = scmp.lt.u32.totalorder %s62_s10, %s147_s0 }
   0x5   :  { %p68_p2 = pnand %p66_p1, %p63_p0 }
   0x7   :  { %71 = shalt.err (!%p68_p2)
}
   0x8   :  { %s72_s15 = scalar_lea.vmem %s15_s7, 128  ;;  %p77_p4 = scmp.lt.s32.totalorder %s15_s7, %s15_s7 }
   0x9   :  { %p73_p3 = scmp.ne.s32.totalorder %s15_s7, %s72_s15  ;;  %p78_p5 = scmp.lt.s32.totalorder %s72_s15, %s72_s15 }
   0xb   :  { %p79_p6 = por %p78_p5, %p77_p4 }
   0xd   :  { %p80_p7 = pnand %p79_p6, %p73_p3 }
   0xf   :  { %83 = shalt.err (!%p80_p7)
}
  0x10   :  { %17 = dma.hbm_to_vmem [thread:$0]  %s147_s0, 128, %s15_s7, [#allocation3]  }
  0x11   :  { %106 = dma.done.wait [#allocation3], 128  }
  0x12   :  { %107 = vsyncadd [#allocation3], 4294967168  ;;  %v21_v0 = vld [vmem:[#allocation2] sm:$0xff]  ;;  %vm28_vm0 = vcmask 7168   ;;  %v111_v3 = vmov 0.0   ;;  %s112_s0 = smov [#allocation5]  }
  0x13   :  { %v22_v1 = vmul.f32 %v21_v0, %v21_v0  ;;  %s47_s18 = sshll.u32 %s112_s0, 4  ;;  %s48_s18 = int_to_ptr.vmem [resolvable:$true] %s47_s18 }
  0x14   :  { %s84_s20 = scalar_lea.vmem %s48_s18, 128  ;;  %p89_p9 = scmp.lt.s32.totalorder %s48_s18, %s48_s18 }
  0x15   :  { %23 = vadd.xlane.f32.xlu0 %v22_v1  ;;  %p85_p8 = scmp.ne.s32.totalorder %s48_s18, %s84_s20  ;;  %p90_p10 = scmp.lt.s32.totalorder %s84_s20, %s84_s20 }
  0x17   :  { %p91_p11 = por %p90_p10, %p89_p9 }
  0x19   :  { %p92_p12 = pnand %p91_p11, %p85_p8 }
  0xa2   :  { %v24_v2 = vpop.xlane.xlu0 %23 }
  0xa3   :  { %vm25_vm1 = vcmp.lt.f32.partialorder %v24_v2, 4.0 }
  0xa4   :  { %v56_v4 = vsel %vm25_vm1, 1.0, %v111_v3 }
  0xa5   :  { %v29_v5 = vsel %vm28_vm0, %v56_v4, 0.0 }
  0xa6   :  { %30 = vadd.xlane.f32.xlu0 %v29_v5 }
 0x133   :  { %v31_v6 = vpop.xlane.xlu0 %30 }
 0x134   :  { %v32_v7 = vrot.slane %v31_v6, 4 }
 0x136   :  { %v33_v8 = vadd.f32 %v32_v7, %v31_v6 }
 0x138   :  { %v34_v9 = vrot.slane %v33_v8, 2 }
 0x13a   :  { %v35_v10 = vadd.f32 %v34_v9, %v33_v8 }
 0x13c   :  { %v36_v11 = vrot.slane %v35_v10, 1 }
 0x13e   :  { %v37_v12 = vadd.f32 %v36_v11, %v35_v10 }
 0x140   :  { %57 = vpush %v37_v12 }
 0x171   :  { %s58_s19 = spop %57 }
 0x172   :  { %v39_v13 = vstv %s58_s19 }
 0x173   :  { %40 = vst [vmem:[#allocation5] sm:$0xff] %v39_v13 }
 0x174   :  { %95 = shalt.err (!%p92_p12)
}
 0x175   :  { %s96_s23 = scalar_lea.hbm %s148_s1, 128 }
 0x176   :  { %p97_p13 = scmp.ne.s32.totalorder %s148_s1, %s96_s23  ;;  %p100_p0 = scmp.lt.u32.totalorder %s96_s23, %s148_s1 }
 0x178   :  { %p102_p1 = pnand %p100_p0, %p97_p13 }
 0x17a   :  { %105 = shalt.err (!%p102_p1)
}
 0x17b   :  { %50 = dma.vmem_to_hbm [thread:$0]  %s48_s18, 128, %s148_s1, [#allocation4]  }
 0x17c   :  { %108 = dma.done.wait [#allocation4], 128  }
 0x17d   :  { %109 = vsyncadd [#allocation4], 4294967168 }
 0x17e   :  { %54 = vsyncpa [#allocation3], 1 }
 0x17f   :  { %55 = vsyncpa [#allocation4], 1 }

</bundles_post_ra>
